<compile_context>
chip_gen: v7x
topology: tpu7x:2x2x1
jax: 0.10.0
libtpu: 0.0.40
codegen_flags: <defaults>
</compile_context>

<pallas_src>
import functools
import math

import numpy as np

import jax
import jax.numpy as jnp
from jax.experimental import pallas as pl
from jax.experimental.pallas import tpu as pltpu

# 13-tap 'near_sym_b' biorthogonal level-1 analysis lowpass filter h0o
# (symmetric, DC gain 1) as used by dtcwt / pytorch_wavelets.
H0O = (
    -0.0017578125, 0.0, 0.022265625, -0.046875, -0.0482421875, 0.296875,
    0.55546875,
    0.296875, -0.0482421875, -0.046875, 0.022265625, 0.0, -0.0017578125,
)
M_PAD = len(H0O) // 2  # = 6 taps of symmetric extension on each side


def _filter_matrix(L):
    """(L, L) operator B so that  y = B @ x  is the 'same'-size h0o filtering
    of a length-L signal with symmetric (edge-including) extension folded in."""
    assert L >= M_PAD, "symmetric extension assumes length >= filter half-width"
    B = np.zeros((L, L), dtype=np.float64)
    for i in range(L):
        for t, c in enumerate(H0O):
            if c == 0.0:
                continue
            p = i + t - M_PAD          # position in the extended signal
            if p < 0:                  # left symmetric reflection
                p = -p - 1
            elif p >= L:               # right symmetric reflection
                p = 2 * L - 1 - p
            B[i, p] += c
    return B


@functools.lru_cache(maxsize=None)
def _lowpass_operator_t(H, W):
    """(H*W, H*W) transposed 2-D lowpass operator: xl_flat = x_flat @ G^T,
    with G = kron(Bh, Bw) acting on row-major flattened (H, W) images."""
    Bh = _filter_matrix(H)
    Bw = _filter_matrix(W)
    G = np.kron(Bh, Bw)                # xl.reshape(HW) = G @ x.reshape(HW)
    return jnp.asarray(G.T, dtype=jnp.float32)


def wave_kernel(x_ref, gt_ref, w1_ref, b1_ref, w2_ref, b2_ref, o_ref):
    """One batch element per grid step.

    x_ref  : (1, C, H*W)  input, channels x flattened-spatial      (VMEM)
    gt_ref : (H*W, H*W)   transposed DTCWT-lowpass operator G^T    (VMEM)
    w1/b1/w2/b2 : 1x1-conv weights (C, C) and biases (C, 1)        (VMEM)
    o_ref  : (1, C, H*W)  output                                   (VMEM)
    """
    x = x_ref[0]                                            # (C, HW)

    # DTCWT J=1 lowpass: separable symmetric near_sym_b filtering folded into
    # one constant operator -> a single MXU matmul, lane-dense (HW) output.
    xl = jnp.dot(x, gt_ref[...], preferred_element_type=jnp.float32)

    # Channel attention: 1x1 conv -> ReLU -> 1x1 conv -> Sigmoid, on the MXU.
    hid = jnp.maximum(
        jnp.dot(w1_ref[...], xl, preferred_element_type=jnp.float32)
        + b1_ref[...], 0.0)
    att = jax.nn.sigmoid(
        jnp.dot(w2_ref[...], hid, preferred_element_type=jnp.float32)
        + b2_ref[...])

    # Gate the original pixels (read from the same block; no duplicate input).
    o_ref[0] = att * x


def wave_forward(x, w1, b1, w2, b2):
    N, C, H, W = x.shape
    HW = H * W

    gt = _lowpass_operator_t(H, W)         # (HW, HW) constant, reused by all n
    x_mat = x.reshape(N, C, HW)            # lane-dense layout (last dim = HW)
    b1c = b1.reshape(C, 1)
    b2c = b2.reshape(C, 1)

    flops = N * (2 * C * HW * HW + 4 * C * C * HW)
    bytes_accessed = 4 * (2 * N * C * HW + HW * HW + 2 * C * C + 2 * C)

    kernel = pl.pallas_call(
        wave_kernel,
        out_shape=jax.ShapeDtypeStruct((N, C, HW), jnp.float32),
        grid_spec=pltpu.PrefetchScalarGridSpec(
            num_scalar_prefetch=0,
            grid=(N,),
            in_specs=[
                pl.BlockSpec((1, C, HW), lambda n: (n, 0, 0)),   # x
                pl.BlockSpec((HW, HW), lambda n: (0, 0)),        # G^T (constant)
                pl.BlockSpec((C, C), lambda n: (0, 0)),          # w1
                pl.BlockSpec((C, 1), lambda n: (0, 0)),          # b1
                pl.BlockSpec((C, C), lambda n: (0, 0)),          # w2
                pl.BlockSpec((C, 1), lambda n: (0, 0)),          # b2
            ],
            out_specs=pl.BlockSpec((1, C, HW), lambda n: (n, 0, 0)),
        ),
        compiler_params=pltpu.CompilerParams(
            dimension_semantics=("parallel",),      # megacore-shardable batch
            vmem_limit_bytes=32 * 1024 * 1024),
        cost_estimate=pl.CostEstimate(
            flops=flops, transcendentals=N * C * HW,
            bytes_accessed=bytes_accessed),
    )
    y_mat = kernel(x_mat, gt, w1, b1c, w2, b2c)
    return y_mat.reshape(N, C, H, W)


def wave_reference(x, w1, b1, w2, b2):
    """Independent pure-JAX reference (explicit symmetric pad + tap loops)."""
    N, C, H, W = x.shape
    xpad = jnp.pad(x, ((0, 0), (0, 0), (M_PAD, M_PAD), (M_PAD, M_PAD)),
                   mode='symmetric')
    tmp = sum(c * xpad[:, :, :, t:t + W] for t, c in enumerate(H0O) if c != 0.0)
    xl = sum(c * tmp[:, :, t:t + H, :] for t, c in enumerate(H0O) if c != 0.0)
    a = jnp.einsum('oc,nchw->nohw', w1, xl) + b1[None, :, None, None]
    a = jnp.maximum(a, 0.0)
    a = jnp.einsum('oc,nchw->nohw', w2, a) + b2[None, :, None, None]
    return jax.nn.sigmoid(a) * x


if __name__ == "__main__":
    N, C, H, W = 2, 4, 16, 16

    key = jax.random.PRNGKey(0)
    kx, k1, k2, k3, k4 = jax.random.split(key, 5)
    x = jax.random.normal(kx, (N, C, H, W), jnp.float32)

    # 1x1 conv params (Conv2d(C, C, 1, bias=True) weights flattened to (C, C))
    bound = 1.0 / math.sqrt(C)
    w1 = jax.random.uniform(k1, (C, C), jnp.float32, -bound, bound)
    b1 = jax.random.uniform(k2, (C,), jnp.float32, -bound, bound)
    w2 = jax.random.uniform(k3, (C, C), jnp.float32, -bound, bound)
    b2 = jax.random.uniform(k4, (C,), jnp.float32, -bound, bound)

    y = jax.block_until_ready(wave_forward(x, w1, b1, w2, b2))
    y_ref = wave_reference(x, w1, b1, w2, b2)

    assert y.shape == (N, C, H, W)
    assert jnp.allclose(y, y_ref, atol=2e-3, rtol=2e-3), "mismatch vs reference"

    # TODO(synk): highpass outputs xH of DTCWTForward are unused by
    # Wave.forward and are intentionally not computed.
    print("KERNEL_OK")
</pallas_src>

<mosaic_0001>
module attributes {stable_mosaic.version = 11 : i64} {
  func.func @wave_kernel(%arg0: i32, %arg1: memref<1x4x256xf32, #tpu.memory_space<vmem>>, %arg2: memref<256x256xf32, #tpu.memory_space<vmem>>, %arg3: memref<4x4xf32, #tpu.memory_space<vmem>>, %arg4: memref<4x1xf32, #tpu.memory_space<vmem>>, %arg5: memref<4x4xf32, #tpu.memory_space<vmem>>, %arg6: memref<4x1xf32, #tpu.memory_space<vmem>>, %arg7: memref<1x4x256xf32, #tpu.memory_space<vmem>>) attributes {dimension_semantics = [#tpu.dimension_semantics<parallel>], iteration_bounds = array<i64: 2>, scalar_prefetch = 0 : i64, scratch_operands = 0 : i64, tpu.core_type = #tpu.core_type<tc>, window_params = [{transform_indices = @transform_0, window_bounds = array<i64: 1, 4, 256>}, {pipeline_mode = #tpu.pipeline_mode<synchronous>, transform_indices = @transform_1, window_bounds = array<i64: 256, 256>}, {pipeline_mode = #tpu.pipeline_mode<synchronous>, transform_indices = @transform_2, window_bounds = array<i64: 4, 4>}, {pipeline_mode = #tpu.pipeline_mode<synchronous>, transform_indices = @transform_3, window_bounds = array<i64: 4, 1>}, {pipeline_mode = #tpu.pipeline_mode<synchronous>, transform_indices = @transform_4, window_bounds = array<i64: 4, 4>}, {pipeline_mode = #tpu.pipeline_mode<synchronous>, transform_indices = @transform_5, window_bounds = array<i64: 4, 1>}, {transform_indices = @transform_6, window_bounds = array<i64: 1, 4, 256>}]} {
    %c0 = arith.constant 0 : index
    %c0_0 = arith.constant 0 : index
    %c0_1 = arith.constant 0 : index
    %0 = vector.load %arg1[%c0, %c0_0, %c0_1] : memref<1x4x256xf32, #tpu.memory_space<vmem>>, vector<1x4x256xf32>
    %1 = vector.shape_cast %0 : vector<1x4x256xf32> to vector<4x256xf32>
    %c0_2 = arith.constant 0 : index
    %c0_3 = arith.constant 0 : index
    %2 = vector.load %arg2[%c0_2, %c0_3] : memref<256x256xf32, #tpu.memory_space<vmem>>, vector<256x256xf32>
    %cst = arith.constant dense<0.000000e+00> : vector<4x256xf32>
    %3 = tpu.matmul %1, %2, %cst {dimension_numbers = #tpu.dot_dimension_numbers<[1], [0], [0], [1], [0, 0, 1, 1], [], []>} : vector<4x256xf32>, vector<256x256xf32>, vector<4x256xf32> -> vector<4x256xf32>
    %c0_4 = arith.constant 0 : index
    %c0_5 = arith.constant 0 : index
    %4 = vector.load %arg3[%c0_4, %c0_5] : memref<4x4xf32, #tpu.memory_space<vmem>>, vector<4x4xf32>
    %cst_6 = arith.constant dense<0.000000e+00> : vector<4x256xf32>
    %5 = tpu.matmul %4, %3, %cst_6 {dimension_numbers = #tpu.dot_dimension_numbers<[1], [0], [0], [1], [0, 0, 1, 1], [], []>} : vector<4x4xf32>, vector<4x256xf32>, vector<4x256xf32> -> vector<4x256xf32>
    %c0_7 = arith.constant 0 : index
    %c0_8 = arith.constant 0 : index
    %6 = vector.load %arg4[%c0_7, %c0_8] : memref<4x1xf32, #tpu.memory_space<vmem>>, vector<4x1xf32>
    %7 = vector.broadcast %6 : vector<4x1xf32> to vector<4x256xf32>
    %8 = arith.addf %5, %7 : vector<4x256xf32>
    %cst_9 = arith.constant 0.000000e+00 : f32
    %9 = vector.broadcast %cst_9 : f32 to vector<4x256xf32>
    %10 = arith.maximumf %8, %9 : vector<4x256xf32>
    %c0_10 = arith.constant 0 : index
    %c0_11 = arith.constant 0 : index
    %11 = vector.load %arg5[%c0_10, %c0_11] : memref<4x4xf32, #tpu.memory_space<vmem>>, vector<4x4xf32>
    %cst_12 = arith.constant dense<0.000000e+00> : vector<4x256xf32>
    %12 = tpu.matmul %11, %10, %cst_12 {dimension_numbers = #tpu.dot_dimension_numbers<[1], [0], [0], [1], [0, 0, 1, 1], [], []>} : vector<4x4xf32>, vector<4x256xf32>, vector<4x256xf32> -> vector<4x256xf32>
    %c0_13 = arith.constant 0 : index
    %c0_14 = arith.constant 0 : index
    %13 = vector.load %arg6[%c0_13, %c0_14] : memref<4x1xf32, #tpu.memory_space<vmem>>, vector<4x1xf32>
    %14 = vector.broadcast %13 : vector<4x1xf32> to vector<4x256xf32>
    %15 = arith.addf %12, %14 : vector<4x256xf32>
    %16 = arith.negf %15 : vector<4x256xf32>
    %17 = math.exp %16 : vector<4x256xf32>
    %cst_15 = arith.constant 1.000000e+00 : f32
    %18 = vector.broadcast %cst_15 : f32 to vector<4x256xf32>
    %19 = arith.addf %18, %17 : vector<4x256xf32>
    %20 = arith.divf %18, %19 : vector<4x256xf32>
    %21 = arith.mulf %20, %1 : vector<4x256xf32>
    %c0_16 = arith.constant 0 : index
    %c0_17 = arith.constant 0 : index
    %c0_18 = arith.constant 0 : index
    %22 = vector.load %arg7[%c0_16, %c0_17, %c0_18] : memref<1x4x256xf32, #tpu.memory_space<vmem>>, vector<1x4x256xf32>
    %23 = vector.shape_cast %22 : vector<1x4x256xf32> to vector<4x256xf32>
    %24 = vector.shape_cast %21 : vector<4x256xf32> to vector<1x4x256xf32>
    tpu.vector_store %arg7[%c0_16, %c0_17, %c0_18], %24 {strides = array<i32>} : memref<1x4x256xf32, #tpu.memory_space<vmem>>, vector<1x4x256xf32>,
    return
  }
  func.func @transform_0(%arg0: i32) -> (i32, i32, i32) {
    %c0_i32 = arith.constant 0 : i32
    %c0_i32_0 = arith.constant 0 : i32
    %c0_i32_1 = arith.constant 0 : i32
    return %arg0, %c0_i32, %c0_i32_0 : i32, i32, i32
  }
  func.func @transform_1(%arg0: i32) -> (i32, i32) {
    %c0_i32 = arith.constant 0 : i32
    %c0_i32_0 = arith.constant 0 : i32
    %c0_i32_1 = arith.constant 0 : i32
    return %c0_i32, %c0_i32_0 : i32, i32
  }
  func.func @transform_2(%arg0: i32) -> (i32, i32) {
    %c0_i32 = arith.constant 0 : i32
    %c0_i32_0 = arith.constant 0 : i32
    %c0_i32_1 = arith.constant 0 : i32
    return %c0_i32, %c0_i32_0 : i32, i32
  }
  func.func @transform_3(%arg0: i32) -> (i32, i32) {
    %c0_i32 = arith.constant 0 : i32
    %c0_i32_0 = arith.constant 0 : i32
    %c0_i32_1 = arith.constant 0 : i32
    return %c0_i32, %c0_i32_0 : i32, i32
  }
  func.func @transform_4(%arg0: i32) -> (i32, i32) {
    %c0_i32 = arith.constant 0 : i32
    %c0_i32_0 = arith.constant 0 : i32
    %c0_i32_1 = arith.constant 0 : i32
    return %c0_i32, %c0_i32_0 : i32, i32
  }
  func.func @transform_5(%arg0: i32) -> (i32, i32) {
    %c0_i32 = arith.constant 0 : i32
    %c0_i32_0 = arith.constant 0 : i32
    %c0_i32_1 = arith.constant 0 : i32
    return %c0_i32, %c0_i32_0 : i32, i32
  }
  func.func @transform_6(%arg0: i32) -> (i32, i32, i32) {
    %c0_i32 = arith.constant 0 : i32
    %c0_i32_0 = arith.constant 0 : i32
    %c0_i32_1 = arith.constant 0 : i32
    return %arg0, %c0_i32, %c0_i32_0 : i32, i32, i32
  }
}

</mosaic_0001>

<bundles_post_ra>
// kernel: tpu_custom_call.1
= control target key start
LH: loop header
LB: loop body
LE: loop exit
PB: predicated region body
PF: predicated region fallthrough
CT: control target
= control target key end

     0   :  { %11 = vsyncpa [#allocation3], 0  ;;  %s1276_s0 = inlined_call_operand.hbm [shape: f32[2,4,256], index: 0, kind: input, shape index: {}]   ;;  %s1277_s1 = inlined_call_operand.hbm [shape: f32[256,256], index: 1, kind: input, shape index: {}]   ;;  %s1278_s2 = inlined_call_operand.vmem [shape: f32[4,4], index: 2, kind: input, shape index: {}]   ;;  %s1279_s3 = inlined_call_operand.vmem [shape: f32[4,1], index: 3, kind: input, shape index: {}]   ;;  %s1280_s4 = inlined_call_operand.vmem [shape: f32[4,4], index: 4, kind: input, shape index: {}]   ;;  %s1281_s5 = inlined_call_operand.vmem [shape: f32[4,1], index: 5, kind: input, shape index: {}]   ;;  %s1282_s6 = inlined_call_operand.hbm [shape: f32[2,4,256], index: 6, kind: output, shape index: {}]  }
   0x1   :  { %13 = vsyncpa [#allocation3 + $0x1], 0 }
   0x2   :  { %14 = vsyncpa [#allocation6], 0 }
   0x3   :  { %15 = vsyncpa [#allocation4], 0 }
   0x4   :  { %17 = vsyncpa [#allocation4 + $0x1], 0  ;;  %s1047_s21 = smov 0   ;;  %s1049_s22 = smov 0  }
   0x5   :  { %s1051_s23 = smov 0   ;;  %s1053_s24 = smov 0  }
   0x6 LB: > { %s1068_s25 = sadd.s32 4294967295, %s1003_s24   ;;  %s714_s26 = sadd.s32 4294967294, %s1003_s24   ;;  %s1003_s24 = sphi %s1053_s24, %s1302_s24   ;;  %s999_s23 = sphi %s1051_s23, %s1301_s23   ;;  %s995_s22 = sphi %s1049_s22, %s1300_s22   ;;  %s991_s21 = sphi %s1047_s21, %s1299_s21  }
   0x7   : > { %p43_p0 = scmp.ne.s32.totalorder %s995_s22, %s991_s21  ;;  %p1283_p1 = scmp.eq.s32.totalorder %s1068_s25, 0 }
   0x8   : > { %p178_p3 = scmp.eq.s32.totalorder %s714_s26, 1  ;;  %p715_p5 = scmp.ge.s32.totalorder %s1003_s24, 1 }
   0x9   : > { %p1077_p4 = por %p1283_p1, %p43_p0  ;;  %p185_p7 = scmp.lt.s32.totalorder %s1003_s24, 3 }
   0xa   : > { %p1082_p6 = por %p178_p3, %p43_p0  ;;  %s1005_s30 = smov [#allocation5]  }
   0xb   : > { %s1286_s27 = scalar_select %p1077_p4, 1, 0 }
   0xc   : > { %s1287_s28 = scalar_select %p1082_p6, 1, 0 }
   0xd   : > { %p1087_p8 = pnand %p715_p5, %p185_p7  ;;  %s197_s7 = sshll.u32 %s1005_s30, 4  ;;  %s1091_s7 = int_to_ptr.vmem [resolvable:$true] %s197_s7 }
   0xe   : > { %s1103_s9 = sadd.s32 1, %s1003_s24   ;;  %s30_s10 = sadd.s32 1, %s999_s23 }
   0xf   : > { %s1288_s29 = scalar_select %p1087_p8, 1, 0 }
  0x10   : > { %p812_p9 = pneg %p1087_p8  ;;  %s27_s11 = ssub.s32 %s1003_s24, %s1103_s9 }
  0x11   : > { %s875_s14 = scalar_lea.hbm %s1277_s1, 8192 }
  0x12   : > { %p1098_p11 = pnand %p812_p9, %p1283_p1  ;;  %p876_p12 = scmp.ne.s32.totalorder %s1277_s1, %s875_s14 }
  0x13   : > { %p882_p5 = scmp.lt.u32.totalorder %s875_s14, %s1277_s1 }
  0x14   : > { %p877_p13 = pneg %p1098_p11 }
  0x16   : > { %p878_p0 = pnand %p877_p13, %p876_p12 }
  0x18   : > { %p879_p3 = pneg %p878_p0 }
  0x1a   : > { %p884_p7 = pnand %p882_p5, %p879_p3 }
  0x1c   : > { %887 = shalt.err (!%p884_p7)
}
  0x1d   : > { %s888_s19 = scalar_lea.vmem %s1091_s7, 8192  ;;  %p896_p2 = scmp.lt.s32.totalorder %s1091_s7, %s1091_s7 }
  0x1e   : > { %p889_p9 = scmp.ne.s32.totalorder %s1091_s7, %s888_s19  ;;  %p897_p6 = scmp.lt.s32.totalorder %s888_s19, %s888_s19 }
  0x20   : > { %p891_p10 = pnand %p889_p9, %p877_p13  ;;  %p898_p4 = por %p897_p6, %p896_p2 }
  0x22   : > { %p892_p1 = pneg %p891_p10 }
  0x24   : > { %p899_p8 = pnand %p898_p4, %p892_p1 }
  0x26   : > { %902 = shalt.err (!%p899_p8)
}
  0x27   : > { %s1006_s20 = smov 256   ;;  %s1007_s26 = smov 16  }
  0x28   : > { %815 = dma.hbm_to_vmem [thread:$0]  (!%p1098_p11), %s1277_s1, 8192, %s1091_s7, [#allocation6], %s1006_s20, %s1006_s20, %s1007_s26  }
  0x29   : > { %p28_p2 = scmp.eq.s32.totalorder %s27_s11, 0  ;;  %p37_p1 = scmp.ne.s32.totalorder %s999_s23, %s995_s22 }
  0x2a   : > { %p38_p4 = scmp.eq.s32.totalorder %s1003_s24, 0  ;;  %p825_p6 = scmp.lt.s32.totalorder %s1003_s24, 2 }
  0x2b   : > { %s1134_s13 = scalar_select %p28_p2, %s999_s23, %s30_s10  }
  0x2c   : > { %p39_p8 = por %p38_p4, %p37_p1  ;;  %p1290_p10 = scmp.eq.s32.totalorder %s1068_s25, 1 }
  0x2d   : > { %s223_s15 = sand.u32 1, %s999_s23   ;;  %s738_s16 = sshll.u32 %s1003_s24, 7 }
  0x2e   : > { %p1138_p12 = por %p1290_p10, %p37_p1  ;;  %s718_s17 = sshll.u32 %s223_s15, 3 }
  0x2f   : > { %s1147_s19 = scalar_lea.hbm %s1276_s0, %s738_s16  ;;  %s227_s7 = scalar_lea.vmem [#allocation2], %s718_s17 }
  0x30   : > { %s235_s10 = sshll.u32 %s227_s7, 4  ;;  %p1149_p11 = pnand %p825_p6, %p39_p8  ;;  %s1153_s10 = int_to_ptr.vmem [resolvable:$true] %s235_s10 }
  0x31   : > { %s224_s20 = scalar_lea.sflag [#allocation3], %s223_s15  ;;  %s903_s26 = scalar_lea.hbm %s1147_s19, 128 }
  0x32   : > { %p904_p13 = scmp.ne.s32.totalorder %s1147_s19, %s903_s26  ;;  %p905_p0 = pneg %p1149_p11 }
  0x33   : > { %s908_s16 = scalar_lea.hbm %s1276_s0, 256  ;;  %p909_p7 = scmp.lt.u32.totalorder %s1147_s19, %s1276_s0 }
  0x34   : > { %p906_p3 = pnand %p905_p0, %p904_p13  ;;  %p910_p9 = scmp.lt.u32.totalorder %s908_s16, %s903_s26 }
  0x35   : > { %p912_p1 = scmp.lt.u32.totalorder %s903_s26, %s1147_s19 }
  0x36   : > { %p907_p5 = pneg %p906_p3  ;;  %p911_p2 = por %p910_p9, %p909_p7 }
  0x38   : > { %p913_p4 = por %p912_p1, %p911_p2 }
  0x3a   : > { %p914_p6 = pnand %p913_p4, %p907_p5 }
  0x3c   : > { %917 = shalt.err (!%p914_p6)
}
  0x3d   : > { %s918_s15 = scalar_lea.vmem %s1153_s10, 128  ;;  %s1008_s18 = smov [#allocation2]  }
  0x3e   : > { %p919_p8 = scmp.ne.s32.totalorder %s1153_s10, %s918_s15  ;;  %s923_s7 = sshll.u32 %s1008_s18, 4  ;;  %s924_s7 = int_to_ptr.vmem [resolvable:$false] %s923_s7 }
  0x3f   : > { %s925_s30 = scalar_lea.vmem %s924_s7, 256  ;;  %p926_p3 = scmp.lt.s32.totalorder %s1153_s10, %s924_s7 }
  0x40   : > { %p921_p10 = pnand %p919_p8, %p905_p0  ;;  %p927_p7 = scmp.lt.s32.totalorder %s925_s30, %s918_s15 }
  0x42   : > { %p922_p13 = pneg %p921_p10  ;;  %p928_p9 = por %p927_p7, %p926_p3 }
  0x44   : > { %p929_p2 = pnand %p928_p9, %p922_p13 }
  0x46   : > { %932 = shalt.err (!%p929_p2)
}
  0x47   : > { %819 = dma.hbm_to_vmem [thread:$0]  (!%p1149_p11), %s1147_s19, 128, %s1153_s10, %s224_s20  }
  0x48   : > { %p1293_p5 = scmp.ne.s32.totalorder %s1288_s29, 0 }
  0x49   : > { %s1183_s26 = sand.u32 (!%p1293_p5), 1, %s995_s22   ;;  %p1294_p0 = scmp.ne.s32.totalorder (!%p1293_p5), %s1286_s27, 0 }
  0x4a   : > { %244 = sbr.rel (%p1293_p5) target bundleno = 845 (0x34d), region = 44  ;;  %s722_s12 = sshll.u32 (!%p1293_p5), %s1183_s26, 3 }
  0x4b   : > { %s247_s16 = scalar_lea.sflag (!%p1293_p5), [#allocation3], %s1183_s26  ;;  %s1189_s17 = scalar_lea.vmem (!%p1293_p5), [#allocation2], %s722_s12 }
  0x51   : > { %978 = dma.done.wait (%p1294_p0), %s247_s16, 128  }
  0x52   : > { %980 = vsyncadd (%p1294_p0), %s247_s16, 4294967168  ;;  %p1295_p11 = scmp.eq.s32.totalorder %s1068_s25, 0 }
  0x54   : > { %982 = dma.done.wait (%p1295_p11), [#allocation6], 8192   ;;  %p1296_p1 = pmov %p1295_p11 }
  0x55   : > { %v285_v0 = vld [vmem:[#allocation5 + $0x8] sm:$0xff]  ;;  %v287_v1 = vld [vmem:[#allocation5 + $0x18] sm:$0xff]  ;;  %v284_v2 = vld [vmem:[#allocation5] sm:$0xff]  ;;  %vm433_vm0 = vcmask 1043456   ;;  %vm429_vm1 = vcmask 31744   ;;  %s739_s18 = sshll.u32 %s1068_s25, 7 }
  0x56   : > { %984 = vsyncadd (%p1296_p1), [#allocation6], 4294959104  ;;  %v740_v3 = vpack.c.bf16 %v287_v1, %v285_v0  ;;  %v286_v4 = vld [vmem:[#allocation5 + $0x10] sm:$0xff]  ;;  %v289_v5 = vld [vmem:[#allocation5 + $0x28] sm:$0xff]  ;;  %s282_s7 = scalar_lea.vmem [#allocation7], %s722_s12  ;;  %s1232_s27 = scalar_lea.hbm %s1282_s6, %s739_s18 }
  0x57   : > { %v291_v6 = vld [vmem:[#allocation5 + $0x38] sm:$0xff]  ;;  %v742_v7 = vpack.c.bf16 %v286_v4, %v284_v2  ;;  %v288_v9 = vld [vmem:[#allocation5 + $0x20] sm:$0xff]  ;;  %v290_v10 = vld [vmem:[#allocation5 + $0x30] sm:$0xff]  ;;  %s634_s30 = sshll.u32 %s282_s7, 4  ;;  %s620_s29 = scalar_lea.sflag [#allocation4], %s1183_s26  ;;  %s1234_s30 = int_to_ptr.vmem [resolvable:$true] %s634_s30 }
  0x58   : > { %v744_v8 = vpack.c.bf16 %v291_v6, %v289_v5  ;;  %v293_v11 = vld [vmem:[#allocation5 + $0x48] sm:$0xff]  ;;  %741 = vmatprep.subr.bf16.mxu0 %v740_v3  ;;  %v295_v12 = vld [vmem:[#allocation5 + $0x58] sm:$0xff]  ;;  %v746_v13 = vpack.c.bf16 %v290_v10, %v288_v9  ;;  %v292_v15 = vld [vmem:[#allocation5 + $0x40] sm:$0xff]  ;;  %s933_s19 = scalar_lea.vmem %s1234_s30, 128  ;;  %s1011_s25 = smov [#allocation7]  }
  0x59   : > { %743 = vmatpush1.bf16.msra.mxu0 %v742_v7  ;;  %v748_v14 = vpack.c.bf16 %v295_v12, %v293_v11  ;;  %v294_v16 = vld [vmem:[#allocation5 + $0x50] sm:$0xff]  ;;  %v297_v17 = vld [vmem:[#allocation5 + $0x68] sm:$0xff]  ;;  %v299_v18 = vld [vmem:[#allocation5 + $0x78] sm:$0xff]  ;;  %p934_p4 = scmp.ne.s32.totalorder %s1234_s30, %s933_s19  ;;  %s937_s12 = sshll.u32 %s1011_s25, 4  ;;  %s938_s12 = int_to_ptr.vmem [resolvable:$false] %s937_s12 }
  0x5a   : > { %745 = vmatprep.subr.bf16.mxu0 %v744_v8  ;;  %v750_v19 = vpack.c.bf16 %v294_v16, %v292_v15  ;;  %v752_v20 = vpack.c.bf16 %v299_v18, %v297_v17  ;;  %v296_v21 = vld [vmem:[#allocation5 + $0x60] sm:$0xff]  ;;  %v298_v22 = vld [vmem:[#allocation5 + $0x70] sm:$0xff]  ;;  %v301_v23 = vld [vmem:[#allocation5 + $0x88] sm:$0xff]  ;;  %s939_s10 = scalar_lea.vmem %s938_s12, 256  ;;  %p940_p10 = scmp.lt.s32.totalorder %s1234_s30, %s938_s12 }
  0x5b   : > { %v303_v24 = vld [vmem:[#allocation5 + $0x98] sm:$0xff]  ;;  %v754_v25 = vpack.c.bf16 %v298_v22, %v296_v21  ;;  %v300_v27 = vld [vmem:[#allocation5 + $0x80] sm:$0xff]  ;;  %v302_v28 = vld [vmem:[#allocation5 + $0x90] sm:$0xff]  ;;  %p935_p6 = pnand %p934_p4, %p1138_p12  ;;  %p941_p13 = scmp.lt.s32.totalorder %s939_s10, %s933_s19 }
  0x5c   : > { %v756_v26 = vpack.c.bf16 %v303_v24, %v301_v23  ;;  %v305_v29 = vld [vmem:[#allocation5 + $0xa8] sm:$0xff]  ;;  %v307_v30 = vld [vmem:[#allocation5 + $0xb8] sm:$0xff]  ;;  %v758_v31 = vpack.c.bf16 %v302_v28, %v300_v27  ;;  %v304_v33 = vld [vmem:[#allocation5 + $0xa0] sm:$0xff] }
  0x5d   : > { %747 = vmatpush1.bf16.msra.mxu0 %v746_v13  ;;  %v760_v32 = vpack.c.bf16 %v307_v30, %v305_v29  ;;  %v306_v34 = vld [vmem:[#allocation5 + $0xb0] sm:$0xff]  ;;  %v309_v35 = vld [vmem:[#allocation5 + $0xc8] sm:$0xff]  ;;  %v311_v36 = vld [vmem:[#allocation5 + $0xd8] sm:$0xff]  ;;  %p936_p8 = pneg %p935_p6  ;;  %p942_p3 = por %p941_p13, %p940_p10 }
  0x5e   : > { %749 = vmatprep.subr.bf16.mxu0 %v748_v14  ;;  %v762_v37 = vpack.c.bf16 %v306_v34, %v304_v33  ;;  %v764_v38 = vpack.c.bf16 %v311_v36, %v309_v35  ;;  %v308_v39 = vld [vmem:[#allocation5 + $0xc0] sm:$0xff]  ;;  %v310_v40 = vld [vmem:[#allocation5 + $0xd0] sm:$0xff]  ;;  %v313_v42 = vld [vmem:[#allocation5 + $0xe8] sm:$0xff]  ;;  %v1009_v34 = vmov 0.0   ;;  %v1010_v36 = vmov 0  }
  0x5f   : > { %v1200_v41 = vld [vmem:[%s1189_s17] sm:$0xff]  ;;  %v766_v45 = vpack.c.bf16 %v310_v40, %v308_v39  ;;  %v312_v47 = vld [vmem:[#allocation5 + $0xe0] sm:$0xff]  ;;  %v317_v49 = vld [vmem:[#allocation5 + $0x108] sm:$0xff]  ;;  %504 = vmatprep.mubr.f32.mxu1 %v1009_v34  ;;  %865 = vset.pattern.permute.xlu0 %v1010_v36  ;;  %p943_p7 = pnand %p942_p3, %p936_p8 }
  0x60   : > { %v315_v43 = vld [vmem:[#allocation5 + $0xf8] sm:$0xff]  ;;  %v1204_v44 = vcombine.high %v1200_v41, %v1200_v41  ;;  %v314_v48 = vld [vmem:[#allocation5 + $0xf0] sm:$0xff]  ;;  %v316_v53 = vld [vmem:[#allocation5 + $0x100] sm:$0xff] }
  0x61   : > { %751 = vmatpush1.bf16.msra.mxu0 %v750_v19  ;;  %v768_v46 = vpack.c.bf16 %v315_v43, %v313_v42  ;;  %v319_v50 = vld [vmem:[#allocation5 + $0x118] sm:$0xff]  ;;  %v770_v51 = vpack.c.bf16 %v314_v48, %v312_v47  ;;  %v318_v54 = vld [vmem:[#allocation5 + $0x110] sm:$0xff]  ;;  %v321_v55 = vld [vmem:[#allocation5 + $0x128] sm:$0xff] }
  0x62   : > { %753 = vmatprep.subr.bf16.mxu0 %v752_v20  ;;  %415 = vmatprep.mubr.f32.mxu0 %v1204_v44  ;;  %v772_v52 = vpack.c.bf16 %v319_v50, %v317_v49  ;;  %v323_v56 = vld [vmem:[#allocation5 + $0x138] sm:$0xff]  ;;  %v774_v57 = vpack.c.bf16 %v318_v54, %v316_v53  ;;  %v320_v59 = vld [vmem:[#allocation5 + $0x120] sm:$0xff]  ;;  %v322_v60 = vld [vmem:[#allocation5 + $0x130] sm:$0xff] }
  0x63   : > { %v776_v58 = vpack.c.bf16 %v323_v56, %v321_v55  ;;  %v325_v61 = vld [vmem:[#allocation5 + $0x148] sm:$0xff]  ;;  %v327_v62 = vld [vmem:[#allocation5 + $0x158] sm:$0xff]  ;;  %v778_v63 = vpack.c.bf16 %v322_v60, %v320_v59  ;;  %v324_v1 = vld [vmem:[#allocation5 + $0x140] sm:$0xff] }
  0x64   : > { %v780_v0 = vpack.c.bf16 %v327_v62, %v325_v61  ;;  %v326_v2 = vld [vmem:[#allocation5 + $0x150] sm:$0xff]  ;;  %v329_v3 = vld [vmem:[#allocation5 + $0x168] sm:$0xff]  ;;  %v331_v4 = vld [vmem:[#allocation5 + $0x178] sm:$0xff] }
  0x65   : > { %755 = vmatpush1.bf16.msra.mxu0 %v754_v25  ;;  %v782_v5 = vpack.c.bf16 %v326_v2, %v324_v1  ;;  %v784_v6 = vpack.c.bf16 %v331_v4, %v329_v3  ;;  %v328_v7 = vld [vmem:[#allocation5 + $0x160] sm:$0xff]  ;;  %v330_v8 = vld [vmem:[#allocation5 + $0x170] sm:$0xff]  ;;  %v333_v9 = vld [vmem:[#allocation5 + $0x188] sm:$0xff] }
  0x66   : > { %757 = vmatprep.subr.bf16.mxu0 %v756_v26  ;;  %v335_v10 = vld [vmem:[#allocation5 + $0x198] sm:$0xff]  ;;  %v786_v11 = vpack.c.bf16 %v330_v8, %v328_v7  ;;  %v332_v13 = vld [vmem:[#allocation5 + $0x180] sm:$0xff]  ;;  %v334_v14 = vld [vmem:[#allocation5 + $0x190] sm:$0xff] }
  0x67   : > { %v788_v12 = vpack.c.bf16 %v335_v10, %v333_v9  ;;  %v337_v15 = vld [vmem:[#allocation5 + $0x1a8] sm:$0xff]  ;;  %v339_v16 = vld [vmem:[#allocation5 + $0x1b8] sm:$0xff]  ;;  %v790_v17 = vpack.c.bf16 %v334_v14, %v332_v13  ;;  %v336_v19 = vld [vmem:[#allocation5 + $0x1a0] sm:$0xff] }
  0x68   : > { %v792_v18 = vpack.c.bf16 %v339_v16, %v337_v15  ;;  %v338_v20 = vld [vmem:[#allocation5 + $0x1b0] sm:$0xff]  ;;  %v341_v21 = vld [vmem:[#allocation5 + $0x1c8] sm:$0xff]  ;;  %v343_v22 = vld [vmem:[#allocation5 + $0x1d8] sm:$0xff] }
  0x69   : > { %759 = vmatpush1.bf16.msra.mxu0 %v758_v31  ;;  %v794_v23 = vpack.c.bf16 %v338_v20, %v336_v19  ;;  %v796_v24 = vpack.c.bf16 %v343_v22, %v341_v21  ;;  %v340_v25 = vld [vmem:[#allocation5 + $0x1c0] sm:$0xff]  ;;  %v342_v26 = vld [vmem:[#allocation5 + $0x1d0] sm:$0xff]  ;;  %v345_v27 = vld [vmem:[#allocation5 + $0x1e8] sm:$0xff] }
  0x6a   : > { %761 = vmatprep.subr.bf16.mxu0 %v760_v32  ;;  %v347_v28 = vld [vmem:[#allocation5 + $0x1f8] sm:$0xff]  ;;  %v798_v29 = vpack.c.bf16 %v342_v26, %v340_v25  ;;  %v344_v31 = vld [vmem:[#allocation5 + $0x1e0] sm:$0xff]  ;;  %v346_v32 = vld [vmem:[#allocation5 + $0x1f0] sm:$0xff] }
  0x6b   : > { %v800_v30 = vpack.c.bf16 %v347_v28, %v345_v27  ;;  %v802_v33 = vpack.c.bf16 %v346_v32, %v344_v31  ;;  %v423_v35 = vld [vmem:[%s1279_s3] sm:$0xf] }
  0x6c   : > { %426 = vperm.xlu0 %865, %v423_v35   ;;  %v422_v40 = vld [vmem:[%s1278_s2] sm:$0xf] }
  0x6d   : > { %763 = vmatpush1.bf16.msra.mxu0 %v762_v37  ;;  %v514_v37 = vld [vmem:[%s1281_s5] sm:$0xf] }
  0x6e   : > { %765 = vmatprep.subr.bf16.mxu0 %v764_v38  ;;  %v513_v50 = vld [vmem:[%s1280_s4] sm:$0xf] }
  0x70   : > { %517 = vperm.xlu0 %865, %v514_v37  }
  0x71   : > { %767 = vmatpush1.bf16.msra.mxu0 %v766_v45 }
  0x72   : > { %769 = vmatprep.subr.bf16.mxu0 %v768_v46 }
  0x75   : > { %771 = vmatpush1.bf16.msra.mxu0 %v770_v51 }
  0x76   : > { %773 = vmatprep.subr.bf16.mxu0 %v772_v52 }
  0x79   : > { %775 = vmatpush1.bf16.msra.mxu0 %v774_v57 }
  0x7a   : > { %777 = vmatprep.subr.bf16.mxu0 %v776_v58 }
  0x7d   : > { %779 = vmatpush1.bf16.msra.mxu0 %v778_v63 }
  0x7e   : > { %781 = vmatprep.subr.bf16.mxu0 %v780_v0 }
  0x81   : > { %783 = vmatpush1.bf16.msra.mxu0 %v782_v5 }
  0x82   : > { %785 = vmatprep.subr.bf16.mxu0 %v784_v6 }
  0x85   : > { %787 = vmatpush1.bf16.msra.mxu0 %v786_v11 }
  0x86   : > { %789 = vmatprep.subr.bf16.mxu0 %v788_v12 }
  0x89   : > { %791 = vmatpush1.bf16.msra.mxu0 %v790_v17 }
  0x8a   : > { %793 = vmatprep.subr.bf16.mxu0 %v792_v18 }
  0x8d   : > { %795 = vmatpush1.bf16.msra.mxu0 %v794_v23 }
  0x8e   : > { %797 = vmatprep.subr.bf16.mxu0 %v796_v24 }
  0x91   : > { %799 = vmatpush1.bf16.msra.mxu0 %v798_v29 }
  0x92   : > { %801 = vmatprep.subr.bf16.mxu0 %v800_v30 }
  0x95   : > { %803 = vmatpush1.bf16.msra.mxu0 %v802_v33 }
  0x98   : > { %416 = vmatmul.mubr.f32.vlgmr.msra.gmra.mrb[0].mxu0 %v1200_v41 }
  0xeb   : > { %v427_v42 = vpop.permute.xlu0 %426 }
  0xef   : > { %v518_v51 = vpop.permute.xlu0 %517 }
 0x16b   : > { %v417_v38 = vpop.f32.mrb[0].mxu0 }
 0x16c   : > { %v419_v39 = vpop.f32.mrb[1].mxu0 }
 0x16d   : > { %725 = vmatprep.subr.msk.mxu1 %vm433_vm0, %v419_v39 }
 0x16e   : > { %726 = vmatpush1.msk.msra.mxu1 %vm433_vm0, %v417_v38 }
 0x16f   : > { %727 = vmatmul.mubr.msk.f32.vlgmr.msra.gmra.mrb[0].mxu1 %vm429_vm1, %v422_v40 }
 0x170   : > { %593 = vmatprep.mubr.f32.mxu1 %v1009_v34 }
 0x242   : > { %v506_v43 = vpop.f32.mrb[0].mxu1 }
 0x243   : > { %v507_v45 = vadd.f32 %v506_v43, %v427_v42  ;;  %v508_v46 = vpop.f32.mrb[1].mxu1 }
 0x244   : > { %v509_v47 = vadd.f32 %v508_v46, %v427_v42 }
 0x245   : > { %v511_v49 = vmax.f32 %v507_v45, 0.0 }
 0x246   : > { %v512_v48 = vmax.f32 %v509_v47, 0.0 }
 0x248   : > { %728 = vmatprep.subr.msk.mxu1 %vm433_vm0, %v512_v48 }
 0x249   : > { %729 = vmatpush1.msk.msra.mxu1 %vm433_vm0, %v511_v49 }
 0x24a   : > { %730 = vmatmul.mubr.msk.f32.vlgmr.msra.gmra.mrb[2].mxu1 %vm429_vm1, %v513_v50 }
 0x31d   : > { %v595_v52 = vpop.f32.mrb[2].mxu1 }
 0x31e   : > { %v596_v53 = vadd.f32 %v595_v52, %v518_v51  ;;  %v597_v54 = vpop.f32.mrb[3].mxu1 }
 0x31f   : > { %v598_v55 = vadd.f32 %v597_v54, %v518_v51 }
 0x320   : > { %v731_v56 = vmul.f32 -1.442695, %v596_v53 }
 0x321   : > { %v732_v57 = vmul.f32 -1.442695, %v598_v55 }
 0x322   : > { %867 = vpow2.f32 %v731_v56 }
 0x323   : > { %869 = vpow2.f32 %v732_v57 }
 0x32c   : > { %v868_v58 = vpop.eup %867 }
 0x32d   : > { %v870_v59 = vpop.eup %869  ;;  %v606_v60 = vadd.f32 1.0, %v868_v58 }
 0x32e   : > { %v607_v61 = vadd.f32 1.0, %v870_v59 }
 0x32f   : > { %871 = vrcp.f32 %v606_v60 }
 0x330   : > { %873 = vrcp.f32 %v607_v61 }
 0x339   : > { %v872_v62 = vpop.eup %871 }
 0x33a   : > { %v874_v63 = vpop.eup %873  ;;  %v612_v0 = vmul.f32 %v872_v62, %v1200_v41 }
 0x33b   : > { %v613_v1 = vmul.f32 %v874_v63, %v1204_v44 }
 0x33d   : > { %v616_v2 = vcombine.low %v612_v0, %v613_v1 }
 0x33f   : > { %618 = vst [vmem:[%s282_s7] sm:$0xff] %v616_v2 }
 0x340   : > { %946 = shalt.err (!%p943_p7)
}
 0x341   : > { %s947_s26 = scalar_lea.hbm %s1232_s27, 128  ;;  %s951_s8 = scalar_lea.hbm %s1282_s6, 256 }
 0x342   : > { %p948_p9 = scmp.ne.s32.totalorder %s1232_s27, %s947_s26  ;;  %p952_p0 = scmp.lt.u32.totalorder %s1232_s27, %s1282_s6 }
 0x343   : > { %p953_p11 = scmp.lt.u32.totalorder %s951_s8, %s947_s26  ;;  %p955_p4 = scmp.lt.u32.totalorder %s947_s26, %s1232_s27 }
 0x344   : > { %p949_p2 = pnand %p948_p9, %p1138_p12 }
 0x345   : > { %p954_p1 = por %p953_p11, %p952_p0 }
 0x346   : > { %p950_p5 = pneg %p949_p2 }
 0x347   : > { %p956_p6 = por %p955_p4, %p954_p1 }
 0x349   : > { %p957_p8 = pnand %p956_p6, %p950_p5 }
 0x34b   : > { %960 = shalt.err (!%p957_p8)
}
 0x34c   : > { %810 = dma.vmem_to_hbm [thread:$0]  (%p1138_p12), %s1234_s30, 128, %s1232_s27, %s620_s29  }
 0x34d PF: > { %s646_s7 = sand.u32 1, %s991_s21   ;;  %p1297_p10 = scmp.ne.s32.totalorder %s1287_s28, 0 }
 0x34e   : > { %p1298_p13 = scmp.ge.s32.totalorder %s1003_s24, 2  ;;  %s647_s16 = scalar_lea.sflag [#allocation4], %s646_s7 }
 0x350   : > { %p821_p3 = pnand %p1298_p13, %p1297_p10 }
 0x352   : > { %986 = dma.done.wait (!%p821_p3), %s647_s16, 128  }
 0x353   : > { %988 = vsyncadd (!%p821_p3), %s647_s16, 4294967168  ;;  %p20_p7 = scmp.ge.s32.totalorder %s1103_s9, 4   ;;  %s1299_s21 = smov %s995_s22 }
 0x354   : > { %s1300_s22 = smov %s999_s23  ;;  %s1301_s23 = smov %s1134_s13 }
 0x355   : > { %s1302_s24 = smov %s1103_s9  ;;  %22 = sbr.rel (!%p20_p7) target bundleno = 6 (0x6), region = 93 }
 0x35c   :  { %652 = vsyncpa [#allocation3], 1 }
 0x35d   :  { %654 = vsyncpa [#allocation3 + $0x1], 1 }
 0x35e   :  { %655 = vsyncpa [#allocation6], 1 }
 0x35f   :  { %656 = vsyncpa [#allocation4], 1 }
 0x360   :  { %658 = vsyncpa [#allocation4 + $0x1], 1 }

</bundles_post_ra>
